<compile_context>
chip_gen: v7x
topology: tpu7x:2x2x1
jax: 0.10.0
libtpu: 0.0.40
codegen_flags: <defaults>
</compile_context>

<pallas_src>
import jax
import jax.numpy as jnp
from jax.experimental import pallas as pl
from jax.experimental.pallas import tpu as pltpu


def make_gru_kernel(T: int, B: int, I: int, H: int, O: int):
    """B is the (sublane-padded) batch used inside the kernel."""

    def kernel(x_ref, wih_ref, whh_ref, bih_ref, bhh_ref, wfc_ref, bfc_ref,
               out_ref, gru_out_ref, gx_sc):
        # ---- Phase 1: hoisted input projection for all timesteps (one matmul).
        gx_sc[...] = (jnp.dot(x_ref[...], wih_ref[...],
                              preferred_element_type=jnp.float32)
                      + bih_ref[...])                                # (T*B, 3H)

        whh = whh_ref[...]                                           # (H, 3H)
        bhh = bhh_ref[...]                                           # (1, 3H)

        # ---- Phase 2: sequential recurrence. Only h @ W_hh^T is on the serial
        # critical path; unrolled so the scheduler sees across steps.
        def step(t, h):
            off = pl.multiple_of(t * B, B)
            gx = gx_sc[pl.ds(off, B), :]                             # (B, 3H)
            gh = jnp.dot(h, whh,
                         preferred_element_type=jnp.float32) + bhh   # (B, 3H)
            r = jax.nn.sigmoid(gx[:, 0:H] + gh[:, 0:H])
            z = jax.nn.sigmoid(gx[:, H:2 * H] + gh[:, H:2 * H])
            n = jnp.tanh(gx[:, 2 * H:3 * H] + r * gh[:, 2 * H:3 * H])
            # (1-z)*n + z*h  ==  n + z*(h - n)   (one fewer VALU op)
            h_new = n + z * (h - n)
            gru_out_ref[pl.ds(off, B), :] = h_new                    # direct store
            return h_new

        h0 = jnp.zeros((B, H), jnp.float32)
        jax.lax.fori_loop(0, T, step, h0, unroll=True)

        # ---- Phase 3: batched FC head, one matmul + single store.
        out_ref[...] = (jnp.dot(gru_out_ref[...], wfc_ref[...],
                                preferred_element_type=jnp.float32)
                        + bfc_ref[...])                              # (T*B, O)

    return kernel


def gru_forward(x, w_ih, w_hh, b_ih, b_hh, w_fc, b_fc):
    """x: (T, B, I); w_ih: (3H, I); w_hh: (3H, H); b_*: (3H,); w_fc: (O, H); b_fc: (O,)."""
    T, B, I = x.shape
    H = w_hh.shape[1]
    O = w_fc.shape[0]

    # Pad batch to a multiple of 8 sublanes (free VMEM-wise, fills vregs/MXU rows).
    Bp = max(8, ((B + 7) // 8) * 8)
    if Bp != B:
        x = jnp.pad(x, ((0, 0), (0, Bp - B), (0, 0)))
    x_flat = jnp.asarray(x, jnp.float32).reshape(T * Bp, I)          # flatten in XLA

    # Weights pre-transposed so every matmul is (rows, K) x (K, cols).
    # f32 kept so results match the f32 reference; on v6e/v7x bf16 operands with
    # f32 accumulation would be a further MXU win.
    wih_t = jnp.asarray(w_ih, jnp.float32).T                 # (I, 3H)
    whh_t = jnp.asarray(w_hh, jnp.float32).T                 # (H, 3H)
    bih = jnp.asarray(b_ih, jnp.float32).reshape(1, 3 * H)   # kept separate: b_hn
    bhh = jnp.asarray(b_hh, jnp.float32).reshape(1, 3 * H)   # lives inside r * (.)
    wfc_t = jnp.asarray(w_fc, jnp.float32).T                 # (H, O)
    bfc = jnp.asarray(b_fc, jnp.float32).reshape(1, O)

    kernel = make_gru_kernel(T, Bp, I, H, O)

    out_flat, gru_flat = pl.pallas_call(
        kernel,
        out_shape=(jax.ShapeDtypeStruct((T * Bp, O), jnp.float32),
                   jax.ShapeDtypeStruct((T * Bp, H), jnp.float32)),
        grid=(1,),
        in_specs=[
            pl.BlockSpec((T * Bp, I), lambda i: (0, 0)),     # x (all timesteps, flat)
            pl.BlockSpec((I, 3 * H), lambda i: (0, 0)),      # W_ih^T
            pl.BlockSpec((H, 3 * H), lambda i: (0, 0)),      # W_hh^T
            pl.BlockSpec((1, 3 * H), lambda i: (0, 0)),      # b_ih
            pl.BlockSpec((1, 3 * H), lambda i: (0, 0)),      # b_hh
            pl.BlockSpec((H, O), lambda i: (0, 0)),          # W_fc^T
            pl.BlockSpec((1, O), lambda i: (0, 0)),          # b_fc
        ],
        out_specs=(
            pl.BlockSpec((T * Bp, O), lambda i: (0, 0)),     # fc output (flat)
            pl.BlockSpec((T * Bp, H), lambda i: (0, 0)),     # gru output (flat)
        ),
        scratch_shapes=[
            pltpu.VMEM((T * Bp, 3 * H), jnp.float32),        # hoisted x-projection
        ],
        compiler_params=pltpu.CompilerParams(
            dimension_semantics=("arbitrary",)),
    )(x_flat, wih_t, whh_t, bih, bhh, wfc_t, bfc)

    out = out_flat.reshape(T, Bp, O)[:, :B]
    gru_out = gru_flat.reshape(T, Bp, H)[:, :B]
    return out, gru_out


def gru_ref(x, w_ih, w_hh, b_ih, b_hh, w_fc, b_fc):
    """Pure-JAX reference matching torch.nn.GRU + nn.Linear semantics."""
    T, B, I = x.shape
    H = w_hh.shape[1]

    def step(h, x_t):
        gx = x_t @ w_ih.T + b_ih
        gh = h @ w_hh.T + b_hh
        r = jax.nn.sigmoid(gx[:, :H] + gh[:, :H])
        z = jax.nn.sigmoid(gx[:, H:2 * H] + gh[:, H:2 * H])
        n = jnp.tanh(gx[:, 2 * H:] + r * gh[:, 2 * H:])
        h = (1.0 - z) * n + z * h
        return h, h

    h0 = jnp.zeros((B, H), jnp.float32)
    _, hs = jax.lax.scan(step, h0, x)
    out = hs @ w_fc.T + b_fc
    return out, hs


if __name__ == "__main__":
    # Small shapes consistent with the module: seq=8, batch=4, input=16, hidden=32, out=8
    T, B, I, H, O = 8, 4, 16, 32, 8

    key = jax.random.PRNGKey(0)
    k = 1.0 / jnp.sqrt(H)
    keys = jax.random.split(key, 7)
    x = jax.random.normal(keys[0], (T, B, I), jnp.float32)
    w_ih = jax.random.uniform(keys[1], (3 * H, I), jnp.float32, -k, k)
    w_hh = jax.random.uniform(keys[2], (3 * H, H), jnp.float32, -k, k)
    b_ih = jax.random.uniform(keys[3], (3 * H,), jnp.float32, -k, k)
    b_hh = jax.random.uniform(keys[4], (3 * H,), jnp.float32, -k, k)
    w_fc = jax.random.uniform(keys[5], (O, H), jnp.float32, -k, k)
    b_fc = jax.random.uniform(keys[6], (O,), jnp.float32, -k, k)

    out, gru_out = gru_forward(x, w_ih, w_hh, b_ih, b_hh, w_fc, b_fc)
    out = jax.block_until_ready(out)
    gru_out = jax.block_until_ready(gru_out)

    ref_out, ref_gru_out = gru_ref(x, w_ih, w_hh, b_ih, b_hh, w_fc, b_fc)
    assert out.shape == (T, B, O) and gru_out.shape == (T, B, H)
    assert jnp.allclose(out, ref_out, rtol=1e-4, atol=1e-4)
    assert jnp.allclose(gru_out, ref_gru_out, rtol=1e-4, atol=1e-4)

    print("KERNEL_OK")
</pallas_src>

<mosaic_0001>
module attributes {stable_mosaic.version = 11 : i64} {
  func.func @kernel(%arg0: i32, %arg1: memref<64x16xf32, #tpu.memory_space<vmem>>, %arg2: memref<16x96xf32, #tpu.memory_space<vmem>>, %arg3: memref<32x96xf32, #tpu.memory_space<vmem>>, %arg4: memref<1x96xf32, #tpu.memory_space<vmem>>, %arg5: memref<1x96xf32, #tpu.memory_space<vmem>>, %arg6: memref<32x8xf32, #tpu.memory_space<vmem>>, %arg7: memref<1x8xf32, #tpu.memory_space<vmem>>, %arg8: memref<64x8xf32, #tpu.memory_space<vmem>>, %arg9: memref<64x32xf32, #tpu.memory_space<vmem>>, %arg10: memref<64x96xf32, #tpu.memory_space<vmem>>) attributes {dimension_semantics = [#tpu.dimension_semantics<arbitrary>], iteration_bounds = array<i64: 1>, scalar_prefetch = 0 : i64, scratch_operands = 1 : i64, tpu.core_type = #tpu.core_type<tc>, window_params = [{pipeline_mode = #tpu.pipeline_mode<synchronous>, transform_indices = @transform_0, window_bounds = array<i64: 64, 16>}, {pipeline_mode = #tpu.pipeline_mode<synchronous>, transform_indices = @transform_1, window_bounds = array<i64: 16, 96>}, {pipeline_mode = #tpu.pipeline_mode<synchronous>, transform_indices = @transform_2, window_bounds = array<i64: 32, 96>}, {pipeline_mode = #tpu.pipeline_mode<synchronous>, transform_indices = @transform_3, window_bounds = array<i64: 1, 96>}, {pipeline_mode = #tpu.pipeline_mode<synchronous>, transform_indices = @transform_4, window_bounds = array<i64: 1, 96>}, {pipeline_mode = #tpu.pipeline_mode<synchronous>, transform_indices = @transform_5, window_bounds = array<i64: 32, 8>}, {pipeline_mode = #tpu.pipeline_mode<synchronous>, transform_indices = @transform_6, window_bounds = array<i64: 1, 8>}, {pipeline_mode = #tpu.pipeline_mode<synchronous>, transform_indices = @transform_7, window_bounds = array<i64: 64, 8>}, {pipeline_mode = #tpu.pipeline_mode<synchronous>, transform_indices = @transform_8, window_bounds = array<i64: 64, 32>}]} {
    %c0 = arith.constant 0 : index
    %c0_0 = arith.constant 0 : index
    %0 = vector.load %arg1[%c0, %c0_0] : memref<64x16xf32, #tpu.memory_space<vmem>>, vector<64x16xf32>
    %c0_1 = arith.constant 0 : index
    %c0_2 = arith.constant 0 : index
    %1 = vector.load %arg2[%c0_1, %c0_2] : memref<16x96xf32, #tpu.memory_space<vmem>>, vector<16x96xf32>
    %cst = arith.constant dense<0.000000e+00> : vector<64x96xf32>
    %2 = tpu.matmul %0, %1, %cst {dimension_numbers = #tpu.dot_dimension_numbers<[1], [0], [0], [1], [0, 0, 1, 1], [], []>} : vector<64x16xf32>, vector<16x96xf32>, vector<64x96xf32> -> vector<64x96xf32>
    %c0_3 = arith.constant 0 : index
    %c0_4 = arith.constant 0 : index
    %3 = vector.load %arg4[%c0_3, %c0_4] : memref<1x96xf32, #tpu.memory_space<vmem>>, vector<1x96xf32>
    %4 = vector.broadcast %3 : vector<1x96xf32> to vector<64x96xf32>
    %5 = arith.addf %2, %4 : vector<64x96xf32>
    %c0_5 = arith.constant 0 : index
    %c0_6 = arith.constant 0 : index
    %6 = vector.load %arg10[%c0_5, %c0_6] : memref<64x96xf32, #tpu.memory_space<vmem>>, vector<64x96xf32>
    tpu.vector_store %arg10[%c0_5, %c0_6], %5 {strides = array<i32>} : memref<64x96xf32, #tpu.memory_space<vmem>>, vector<64x96xf32>,
    %c0_7 = arith.constant 0 : index
    %c0_8 = arith.constant 0 : index
    %7 = vector.load %arg3[%c0_7, %c0_8] : memref<32x96xf32, #tpu.memory_space<vmem>>, vector<32x96xf32>
    %c0_9 = arith.constant 0 : index
    %c0_10 = arith.constant 0 : index
    %8 = vector.load %arg5[%c0_9, %c0_10] : memref<1x96xf32, #tpu.memory_space<vmem>>, vector<1x96xf32>
    %cst_11 = arith.constant 0.000000e+00 : f32
    %9 = vector.broadcast %cst_11 : f32 to vector<8x32xf32>
    %c0_i32 = arith.constant 0 : i32
    %c8_i32 = arith.constant 8 : i32
    %10 = arith.muli %c0_i32, %c8_i32 : i32
    %11 = tpu.assume_multiple %10, 8 : i32
    %12 = arith.index_cast %11 : i32 to index
    %c0_12 = arith.constant 0 : index
    %13 = vector.load %arg10[%12, %c0_12] : memref<64x96xf32, #tpu.memory_space<vmem>>, vector<8x96xf32>
    %cst_13 = arith.constant dense<0.000000e+00> : vector<8x96xf32>
    %14 = tpu.matmul %9, %7, %cst_13 {dimension_numbers = #tpu.dot_dimension_numbers<[1], [0], [0], [1], [0, 0, 1, 1], [], []>} : vector<8x32xf32>, vector<32x96xf32>, vector<8x96xf32> -> vector<8x96xf32>
    %15 = vector.broadcast %8 : vector<1x96xf32> to vector<8x96xf32>
    %16 = arith.addf %14, %15 : vector<8x96xf32>
    %17 = vector.extract_strided_slice %13 {offsets = [0, 0], sizes = [8, 32], strides = [1, 1]} : vector<8x96xf32> to vector<8x32xf32>
    %18 = vector.extract_strided_slice %16 {offsets = [0, 0], sizes = [8, 32], strides = [1, 1]} : vector<8x96xf32> to vector<8x32xf32>
    %19 = arith.addf %17, %18 : vector<8x32xf32>
    %20 = arith.negf %19 : vector<8x32xf32>
    %21 = math.exp %20 : vector<8x32xf32>
    %cst_14 = arith.constant 1.000000e+00 : f32
    %22 = vector.broadcast %cst_14 : f32 to vector<8x32xf32>
    %23 = arith.addf %22, %21 : vector<8x32xf32>
    %24 = arith.divf %22, %23 : vector<8x32xf32>
    %25 = vector.extract_strided_slice %13 {offsets = [0, 32], sizes = [8, 32], strides = [1, 1]} : vector<8x96xf32> to vector<8x32xf32>
    %26 = vector.extract_strided_slice %16 {offsets = [0, 32], sizes = [8, 32], strides = [1, 1]} : vector<8x96xf32> to vector<8x32xf32>
    %27 = arith.addf %25, %26 : vector<8x32xf32>
    %28 = arith.negf %27 : vector<8x32xf32>
    %29 = math.exp %28 : vector<8x32xf32>
    %cst_15 = arith.constant 1.000000e+00 : f32
    %30 = vector.broadcast %cst_15 : f32 to vector<8x32xf32>
    %31 = arith.addf %30, %29 : vector<8x32xf32>
    %32 = arith.divf %30, %31 : vector<8x32xf32>
    %33 = vector.extract_strided_slice %13 {offsets = [0, 64], sizes = [8, 32], strides = [1, 1]} : vector<8x96xf32> to vector<8x32xf32>
    %34 = vector.extract_strided_slice %16 {offsets = [0, 64], sizes = [8, 32], strides = [1, 1]} : vector<8x96xf32> to vector<8x32xf32>
    %35 = arith.mulf %24, %34 : vector<8x32xf32>
    %36 = arith.addf %33, %35 : vector<8x32xf32>
    %37 = math.tanh %36 : vector<8x32xf32>
    %38 = arith.subf %9, %37 : vector<8x32xf32>
    %39 = arith.mulf %32, %38 : vector<8x32xf32>
    %40 = arith.addf %37, %39 : vector<8x32xf32>
    %41 = arith.index_cast %11 : i32 to index
    %c0_16 = arith.constant 0 : index
    %42 = vector.load %arg9[%41, %c0_16] : memref<64x32xf32, #tpu.memory_space<vmem>>, vector<8x32xf32>
    tpu.vector_store %arg9[%41, %c0_16], %40 {strides = array<i32>} : memref<64x32xf32, #tpu.memory_space<vmem>>, vector<8x32xf32>,
    %c1_i32 = arith.constant 1 : i32
    %c8_i32_17 = arith.constant 8 : i32
    %43 = arith.muli %c1_i32, %c8_i32_17 : i32
    %44 = tpu.assume_multiple %43, 8 : i32
    %45 = arith.index_cast %44 : i32 to index
    %c0_18 = arith.constant 0 : index
    %46 = vector.load %arg10[%45, %c0_18] : memref<64x96xf32, #tpu.memory_space<vmem>>, vector<8x96xf32>
    %cst_19 = arith.constant dense<0.000000e+00> : vector<8x96xf32>
    %47 = tpu.matmul %40, %7, %cst_19 {dimension_numbers = #tpu.dot_dimension_numbers<[1], [0], [0], [1], [0, 0, 1, 1], [], []>} : vector<8x32xf32>, vector<32x96xf32>, vector<8x96xf32> -> vector<8x96xf32>
    %48 = vector.broadcast %8 : vector<1x96xf32> to vector<8x96xf32>
    %49 = arith.addf %47, %48 : vector<8x96xf32>
    %50 = vector.extract_strided_slice %46 {offsets = [0, 0], sizes = [8, 32], strides = [1, 1]} : vector<8x96xf32> to vector<8x32xf32>
    %51 = vector.extract_strided_slice %49 {offsets = [0, 0], sizes = [8, 32], strides = [1, 1]} : vector<8x96xf32> to vector<8x32xf32>
    %52 = arith.addf %50, %51 : vector<8x32xf32>
    %53 = arith.negf %52 : vector<8x32xf32>
    %54 = math.exp %53 : vector<8x32xf32>
    %cst_20 = arith.constant 1.000000e+00 : f32
    %55 = vector.broadcast %cst_20 : f32 to vector<8x32xf32>
    %56 = arith.addf %55, %54 : vector<8x32xf32>
    %57 = arith.divf %55, %56 : vector<8x32xf32>
    %58 = vector.extract_strided_slice %46 {offsets = [0, 32], sizes = [8, 32], strides = [1, 1]} : vector<8x96xf32> to vector<8x32xf32>
    %59 = vector.extract_strided_slice %49 {offsets = [0, 32], sizes = [8, 32], strides = [1, 1]} : vector<8x96xf32> to vector<8x32xf32>
    %60 = arith.addf %58, %59 : vector<8x32xf32>
    %61 = arith.negf %60 : vector<8x32xf32>
    %62 = math.exp %61 : vector<8x32xf32>
    %cst_21 = arith.constant 1.000000e+00 : f32
    %63 = vector.broadcast %cst_21 : f32 to vector<8x32xf32>
    %64 = arith.addf %63, %62 : vector<8x32xf32>
    %65 = arith.divf %63, %64 : vector<8x32xf32>
    %66 = vector.extract_strided_slice %46 {offsets = [0, 64], sizes = [8, 32], strides = [1, 1]} : vector<8x96xf32> to vector<8x32xf32>
    %67 = vector.extract_strided_slice %49 {offsets = [0, 64], sizes = [8, 32], strides = [1, 1]} : vector<8x96xf32> to vector<8x32xf32>
    %68 = arith.mulf %57, %67 : vector<8x32xf32>
    %69 = arith.addf %66, %68 : vector<8x32xf32>
    %70 = math.tanh %69 : vector<8x32xf32>
    %71 = arith.subf %40, %70 : vector<8x32xf32>
    %72 = arith.mulf %65, %71 : vector<8x32xf32>
    %73 = arith.addf %70, %72 : vector<8x32xf32>
    %74 = arith.index_cast %44 : i32 to index
    %c0_22 = arith.constant 0 : index
    %75 = vector.load %arg9[%74, %c0_22] : memref<64x32xf32, #tpu.memory_space<vmem>>, vector<8x32xf32>
    tpu.vector_store %arg9[%74, %c0_22], %73 {strides = array<i32>} : memref<64x32xf32, #tpu.memory_space<vmem>>, vector<8x32xf32>,
    %c2_i32 = arith.constant 2 : i32
    %c8_i32_23 = arith.constant 8 : i32
    %76 = arith.muli %c2_i32, %c8_i32_23 : i32
    %77 = tpu.assume_multiple %76, 8 : i32
    %78 = arith.index_cast %77 : i32 to index
    %c0_24 = arith.constant 0 : index
    %79 = vector.load %arg10[%78, %c0_24] : memref<64x96xf32, #tpu.memory_space<vmem>>, vector<8x96xf32>
    %cst_25 = arith.constant dense<0.000000e+00> : vector<8x96xf32>
    %80 = tpu.matmul %73, %7, %cst_25 {dimension_numbers = #tpu.dot_dimension_numbers<[1], [0], [0], [1], [0, 0, 1, 1], [], []>} : vector<8x32xf32>, vector<32x96xf32>, vector<8x96xf32> -> vector<8x96xf32>
    %81 = vector.broadcast %8 : vector<1x96xf32> to vector<8x96xf32>
    %82 = arith.addf %80, %81 : vector<8x96xf32>
    %83 = vector.extract_strided_slice %79 {offsets = [0, 0], sizes = [8, 32], strides = [1, 1]} : vector<8x96xf32> to vector<8x32xf32>
    %84 = vector.extract_strided_slice %82 {offsets = [0, 0], sizes = [8, 32], strides = [1, 1]} : vector<8x96xf32> to vector<8x32xf32>
    %85 = arith.addf %83, %84 : vector<8x32xf32>
    %86 = arith.negf %85 : vector<8x32xf32>
    %87 = math.exp %86 : vector<8x32xf32>
    %cst_26 = arith.constant 1.000000e+00 : f32
    %88 = vector.broadcast %cst_26 : f32 to vector<8x32xf32>
    %89 = arith.addf %88, %87 : vector<8x32xf32>
    %90 = arith.divf %88, %89 : vector<8x32xf32>
    %91 = vector.extract_strided_slice %79 {offsets = [0, 32], sizes = [8, 32], strides = [1, 1]} : vector<8x96xf32> to vector<8x32xf32>
    %92 = vector.extract_strided_slice %82 {offsets = [0, 32], sizes = [8, 32], strides = [1, 1]} : vector<8x96xf32> to vector<8x32xf32>
    %93 = arith.addf %91, %92 : vector<8x32xf32>
    %94 = arith.negf %93 : vector<8x32xf32>
    %95 = math.exp %94 : vector<8x32xf32>
    %cst_27 = arith.constant 1.000000e+00 : f32
    %96 = vector.broadcast %cst_27 : f32 to vector<8x32xf32>
    %97 = arith.addf %96, %95 : vector<8x32xf32>
    %98 = arith.divf %96, %97 : vector<8x32xf32>
    %99 = vector.extract_strided_slice %79 {offsets = [0, 64], sizes = [8, 32], strides = [1, 1]} : vector<8x96xf32> to vector<8x32xf32>
    %100 = vector.extract_strided_slice %82 {offsets = [0, 64], sizes = [8, 32], strides = [1, 1]} : vector<8x96xf32> to vector<8x32xf32>
    %101 = arith.mulf %90, %100 : vector<8x32xf32>
    %102 = arith.addf %99, %101 : vector<8x32xf32>
    %103 = math.tanh %102 : vector<8x32xf32>
    %104 = arith.subf %73, %103 : vector<8x32xf32>
    %105 = arith.mulf %98, %104 : vector<8x32xf32>
    %106 = arith.addf %103, %105 : vector<8x32xf32>
    %107 = arith.index_cast %77 : i32 to index
    %c0_28 = arith.constant 0 : index
    %108 = vector.load %arg9[%107, %c0_28] : memref<64x32xf32, #tpu.memory_space<vmem>>, vector<8x32xf32>
    tpu.vector_store %arg9[%107, %c0_28], %106 {strides = array<i32>} : memref<64x32xf32, #tpu.memory_space<vmem>>, vector<8x32xf32>,
    %c3_i32 = arith.constant 3 : i32
    %c8_i32_29 = arith.constant 8 : i32
    %109 = arith.muli %c3_i32, %c8_i32_29 : i32
    %110 = tpu.assume_multiple %109, 8 : i32
    %111 = arith.index_cast %110 : i32 to index
    %c0_30 = arith.constant 0 : index
    %112 = vector.load %arg10[%111, %c0_30] : memref<64x96xf32, #tpu.memory_space<vmem>>, vector<8x96xf32>
    %cst_31 = arith.constant dense<0.000000e+00> : vector<8x96xf32>
    %113 = tpu.matmul %106, %7, %cst_31 {dimension_numbers = #tpu.dot_dimension_numbers<[1], [0], [0], [1], [0, 0, 1, 1], [], []>} : vector<8x32xf32>, vector<32x96xf32>, vector<8x96xf32> -> vector<8x96xf32>
    %114 = vector.broadcast %8 : vector<1x96xf32> to vector<8x96xf32>
    %115 = arith.addf %113, %114 : vector<8x96xf32>
    %116 = vector.extract_strided_slice %112 {offsets = [0, 0], sizes = [8, 32], strides = [1, 1]} : vector<8x96xf32> to vector<8x32xf32>
    %117 = vector.extract_strided_slice %115 {offsets = [0, 0], sizes = [8, 32], strides = [1, 1]} : vector<8x96xf32> to vector<8x32xf32>
    %118 = arith.addf %116, %117 : vector<8x32xf32>
    %119 = arith.negf %118 : vector<8x32xf32>
    %120 = math.exp %119 : vector<8x32xf32>
    %cst_32 = arith.constant 1.000000e+00 : f32
    %121 = vector.broadcast %cst_32 : f32 to vector<8x32xf32>
    %122 = arith.addf %121, %120 : vector<8x32xf32>
    %123 = arith.divf %121, %122 : vector<8x32xf32>
    %124 = vector.extract_strided_slice %112 {offsets = [0, 32], sizes = [8, 32], strides = [1, 1]} : vector<8x96xf32> to vector<8x32xf32>
    %125 = vector.extract_strided_slice %115 {offsets = [0, 32], sizes = [8, 32], strides = [1, 1]} : vector<8x96xf32> to vector<8x32xf32>
    %126 = arith.addf %124, %125 : vector<8x32xf32>
    %127 = arith.negf %126 : vector<8x32xf32>
    %128 = math.exp %127 : vector<8x32xf32>
    %cst_33 = arith.constant 1.000000e+00 : f32
    %129 = vector.broadcast %cst_33 : f32 to vector<8x32xf32>
    %130 = arith.addf %129, %128 : vector<8x32xf32>
    %131 = arith.divf %129, %130 : vector<8x32xf32>
    %132 = vector.extract_strided_slice %112 {offsets = [0, 64], sizes = [8, 32], strides = [1, 1]} : vector<8x96xf32> to vector<8x32xf32>
    %133 = vector.extract_strided_slice %115 {offsets = [0, 64], sizes = [8, 32], strides = [1, 1]} : vector<8x96xf32> to vector<8x32xf32>
    %134 = arith.mulf %123, %133 : vector<8x32xf32>
    %135 = arith.addf %132, %134 : vector<8x32xf32>
    %136 = math.tanh %135 : vector<8x32xf32>
    %137 = arith.subf %106, %136 : vector<8x32xf32>
    %138 = arith.mulf %131, %137 : vector<8x32xf32>
    %139 = arith.addf %136, %138 : vector<8x32xf32>
    %140 = arith.index_cast %110 : i32 to index
    %c0_34 = arith.constant 0 : index
    %141 = vector.load %arg9[%140, %c0_34] : memref<64x32xf32, #tpu.memory_space<vmem>>, vector<8x32xf32>
    tpu.vector_store %arg9[%140, %c0_34], %139 {strides = array<i32>} : memref<64x32xf32, #tpu.memory_space<vmem>>, vector<8x32xf32>,
    %c4_i32 = arith.constant 4 : i32
    %c8_i32_35 = arith.constant 8 : i32
    %142 = arith.muli %c4_i32, %c8_i32_35 : i32
    %143 = tpu.assume_multiple %142, 8 : i32
    %144 = arith.index_cast %143 : i32 to index
    %c0_36 = arith.constant 0 : index
    %145 = vector.load %arg10[%144, %c0_36] : memref<64x96xf32, #tpu.memory_space<vmem>>, vector<8x96xf32>
    %cst_37 = arith.constant dense<0.000000e+00> : vector<8x96xf32>
    %146 = tpu.matmul %139, %7, %cst_37 {dimension_numbers = #tpu.dot_dimension_numbers<[1], [0], [0], [1], [0, 0, 1, 1], [], []>} : vector<8x32xf32>, vector<32x96xf32>, vector<8x96xf32> -> vector<8x96xf32>
    %147 = vector.broadcast %8 : vector<1x96xf32> to vector<8x96xf32>
    %148 = arith.addf %146, %147 : vector<8x96xf32>
    %149 = vector.extract_strided_slice %145 {offsets = [0, 0], sizes = [8, 32], strides = [1, 1]} : vector<8x96xf32> to vector<8x32xf32>
    %150 = vector.extract_strided_slice %148 {offsets = [0, 0], sizes = [8, 32], strides = [1, 1]} : vector<8x96xf32> to vector<8x32xf32>
    %151 = arith.addf %149, %150 : vector<8x32xf32>
    %152 = arith.negf %151 : vector<8x32xf32>
    %153 = math.exp %152 : vector<8x32xf32>
    %cst_38 = arith.constant 1.000000e+00 : f32
    %154 = vector.broadcast %cst_38 : f32 to vector<8x32xf32>
    %155 = arith.addf %154, %153 : vector<8x32xf32>
    %156 = arith.divf %154, %155 : vector<8x32xf32>
    %157 = vector.extract_strided_slice %145 {offsets = [0, 32], sizes = [8, 32], strides = [1, 1]} : vector<8x96xf32> to vector<8x32xf32>
    %158 = vector.extract_strided_slice %148 {offsets = [0, 32], sizes = [8, 32], strides = [1, 1]} : vector<8x96xf32> to vector<8x32xf32>
    %159 = arith.addf %157, %158 : vector<8x32xf32>
    %160 = arith.negf %159 : vector<8x32xf32>
    %161 = math.exp %160 : vector<8x32xf32>
    %cst_39 = arith.constant 1.000000e+00 : f32
    %162 = vector.broadcast %cst_39 : f32 to vector<8x32xf32>
    %163 = arith.addf %162, %161 : vector<8x32xf32>
    %164 = arith.divf %162, %163 : vector<8x32xf32>
    %165 = vector.extract_strided_slice %145 {offsets = [0, 64], sizes = [8, 32], strides = [1, 1]} : vector<8x96xf32> to vector<8x32xf32>
    %166 = vector.extract_strided_slice %148 {offsets = [0, 64], sizes = [8, 32], strides = [1, 1]} : vector<8x96xf32> to vector<8x32xf32>
    %167 = arith.mulf %156, %166 : vector<8x32xf32>
    %168 = arith.addf %165, %167 : vector<8x32xf32>
    %169 = math.tanh %168 : vector<8x32xf32>
    %170 = arith.subf %139, %169 : vector<8x32xf32>
    %171 = arith.mulf %164, %170 : vector<8x32xf32>
    %172 = arith.addf %169, %171 : vector<8x32xf32>
    %173 = arith.index_cast %143 : i32 to index
    %c0_40 = arith.constant 0 : index
    %174 = vector.load %arg9[%173, %c0_40] : memref<64x32xf32, #tpu.memory_space<vmem>>, vector<8x32xf32>
    tpu.vector_store %arg9[%173, %c0_40], %172 {strides = array<i32>} : memref<64x32xf32, #tpu.memory_space<vmem>>, vector<8x32xf32>,
    %c5_i32 = arith.constant 5 : i32
    %c8_i32_41 = arith.constant 8 : i32
    %175 = arith.muli %c5_i32, %c8_i32_41 : i32
    %176 = tpu.assume_multiple %175, 8 : i32
    %177 = arith.index_cast %176 : i32 to index
    %c0_42 = arith.constant 0 : index
    %178 = vector.load %arg10[%177, %c0_42] : memref<64x96xf32, #tpu.memory_space<vmem>>, vector<8x96xf32>
    %cst_43 = arith.constant dense<0.000000e+00> : vector<8x96xf32>
    %179 = tpu.matmul %172, %7, %cst_43 {dimension_numbers = #tpu.dot_dimension_numbers<[1], [0], [0], [1], [0, 0, 1, 1], [], []>} : vector<8x32xf32>, vector<32x96xf32>, vector<8x96xf32> -> vector<8x96xf32>
    %180 = vector.broadcast %8 : vector<1x96xf32> to vector<8x96xf32>
    %181 = arith.addf %179, %180 : vector<8x96xf32>
    %182 = vector.extract_strided_slice %178 {offsets = [0, 0], sizes = [8, 32], strides = [1, 1]} : vector<8x96xf32> to vector<8x32xf32>
    %183 = vector.extract_strided_slice %181 {offsets = [0, 0], sizes = [8, 32], strides = [1, 1]} : vector<8x96xf32> to vector<8x32xf32>
    %184 = arith.addf %182, %183 : vector<8x32xf32>
    %185 = arith.negf %184 : vector<8x32xf32>
    %186 = math.exp %185 : vector<8x32xf32>
    %cst_44 = arith.constant 1.000000e+00 : f32
    %187 = vector.broadcast %cst_44 : f32 to vector<8x32xf32>
    %188 = arith.addf %187, %186 : vector<8x32xf32>
    %189 = arith.divf %187, %188 : vector<8x32xf32>
    %190 = vector.extract_strided_slice %178 {offsets = [0, 32], sizes = [8, 32], strides = [1, 1]} : vector<8x96xf32> to vector<8x32xf32>
    %191 = vector.extract_strided_slice %181 {offsets = [0, 32], sizes = [8, 32], strides = [1, 1]} : vector<8x96xf32> to vector<8x32xf32>
    %192 = arith.addf %190, %191 : vector<8x32xf32>
    %193 = arith.negf %192 : vector<8x32xf32>
    %194 = math.exp %193 : vector<8x32xf32>
    %cst_45 = arith.constant 1.000000e+00 : f32
    %195 = vector.broadcast %cst_45 : f32 to vector<8x32xf32>
    %196 = arith.addf %195, %194 : vector<8x32xf32>
    %197 = arith.divf %195, %196 : vector<8x32xf32>
    %198 = vector.extract_strided_slice %178 {offsets = [0, 64], sizes = [8, 32], strides = [1, 1]} : vector<8x96xf32> to vector<8x32xf32>
    %199 = vector.extract_strided_slice %181 {offsets = [0, 64], sizes = [8, 32], strides = [1, 1]} : vector<8x96xf32> to vector<8x32xf32>
    %200 = arith.mulf %189, %199 : vector<8x32xf32>
    %201 = arith.addf %198, %200 : vector<8x32xf32>
    %202 = math.tanh %201 : vector<8x32xf32>
    %203 = arith.subf %172, %202 : vector<8x32xf32>
    %204 = arith.mulf %197, %203 : vector<8x32xf32>
    %205 = arith.addf %202, %204 : vector<8x32xf32>
    %206 = arith.index_cast %176 : i32 to index
    %c0_46 = arith.constant 0 : index
    %207 = vector.load %arg9[%206, %c0_46] : memref<64x32xf32, #tpu.memory_space<vmem>>, vector<8x32xf32>
    tpu.vector_store %arg9[%206, %c0_46], %205 {strides = array<i32>} : memref<64x32xf32, #tpu.memory_space<vmem>>, vector<8x32xf32>,
    %c6_i32 = arith.constant 6 : i32
    %c8_i32_47 = arith.constant 8 : i32
    %208 = arith.muli %c6_i32, %c8_i32_47 : i32
    %209 = tpu.assume_multiple %208, 8 : i32
    %210 = arith.index_cast %209 : i32 to index
    %c0_48 = arith.constant 0 : index
    %211 = vector.load %arg10[%210, %c0_48] : memref<64x96xf32, #tpu.memory_space<vmem>>, vector<8x96xf32>
    %cst_49 = arith.constant dense<0.000000e+00> : vector<8x96xf32>
    %212 = tpu.matmul %205, %7, %cst_49 {dimension_numbers = #tpu.dot_dimension_numbers<[1], [0], [0], [1], [0, 0, 1, 1], [], []>} : vector<8x32xf32>, vector<32x96xf32>, vector<8x96xf32> -> vector<8x96xf32>
    %213 = vector.broadcast %8 : vector<1x96xf32> to vector<8x96xf32>
    %214 = arith.addf %212, %213 : vector<8x96xf32>
    %215 = vector.extract_strided_slice %211 {offsets = [0, 0], sizes = [8, 32], strides = [1, 1]} : vector<8x96xf32> to vector<8x32xf32>
    %216 = vector.extract_strided_slice %214 {offsets = [0, 0], sizes = [8, 32], strides = [1, 1]} : vector<8x96xf32> to vector<8x32xf32>
    %217 = arith.addf %215, %216 : vector<8x32xf32>
    %218 = arith.negf %217 : vector<8x32xf32>
    %219 = math.exp %218 : vector<8x32xf32>
    %cst_50 = arith.constant 1.000000e+00 : f32
    %220 = vector.broadcast %cst_50 : f32 to vector<8x32xf32>
    %221 = arith.addf %220, %219 : vector<8x32xf32>
    %222 = arith.divf %220, %221 : vector<8x32xf32>
    %223 = vector.extract_strided_slice %211 {offsets = [0, 32], sizes = [8, 32], strides = [1, 1]} : vector<8x96xf32> to vector<8x32xf32>
    %224 = vector.extract_strided_slice %214 {offsets = [0, 32], sizes = [8, 32], strides = [1, 1]} : vector<8x96xf32> to vector<8x32xf32>
    %225 = arith.addf %223, %224 : vector<8x32xf32>
    %226 = arith.negf %225 : vector<8x32xf32>
    %227 = math.exp %226 : vector<8x32xf32>
    %cst_51 = arith.constant 1.000000e+00 : f32
    %228 = vector.broadcast %cst_51 : f32 to vector<8x32xf32>
    %229 = arith.addf %228, %227 : vector<8x32xf32>
    %230 = arith.divf %228, %229 : vector<8x32xf32>
    %231 = vector.extract_strided_slice %211 {offsets = [0, 64], sizes = [8, 32], strides = [1, 1]} : vector<8x96xf32> to vector<8x32xf32>
    %232 = vector.extract_strided_slice %214 {offsets = [0, 64], sizes = [8, 32], strides = [1, 1]} : vector<8x96xf32> to vector<8x32xf32>
    %233 = arith.mulf %222, %232 : vector<8x32xf32>
    %234 = arith.addf %231, %233 : vector<8x32xf32>
    %235 = math.tanh %234 : vector<8x32xf32>
    %236 = arith.subf %205, %235 : vector<8x32xf32>
    %237 = arith.mulf %230, %236 : vector<8x32xf32>
    %238 = arith.addf %235, %237 : vector<8x32xf32>
    %239 = arith.index_cast %209 : i32 to index
    %c0_52 = arith.constant 0 : index
    %240 = vector.load %arg9[%239, %c0_52] : memref<64x32xf32, #tpu.memory_space<vmem>>, vector<8x32xf32>
    tpu.vector_store %arg9[%239, %c0_52], %238 {strides = array<i32>} : memref<64x32xf32, #tpu.memory_space<vmem>>, vector<8x32xf32>,
    %c7_i32 = arith.constant 7 : i32
    %c8_i32_53 = arith.constant 8 : i32
    %241 = arith.muli %c7_i32, %c8_i32_53 : i32
    %242 = tpu.assume_multiple %241, 8 : i32
    %243 = arith.index_cast %242 : i32 to index
    %c0_54 = arith.constant 0 : index
    %244 = vector.load %arg10[%243, %c0_54] : memref<64x96xf32, #tpu.memory_space<vmem>>, vector<8x96xf32>
    %cst_55 = arith.constant dense<0.000000e+00> : vector<8x96xf32>
    %245 = tpu.matmul %238, %7, %cst_55 {dimension_numbers = #tpu.dot_dimension_numbers<[1], [0], [0], [1], [0, 0, 1, 1], [], []>} : vector<8x32xf32>, vector<32x96xf32>, vector<8x96xf32> -> vector<8x96xf32>
    %246 = vector.broadcast %8 : vector<1x96xf32> to vector<8x96xf32>
    %247 = arith.addf %245, %246 : vector<8x96xf32>
    %248 = vector.extract_strided_slice %244 {offsets = [0, 0], sizes = [8, 32], strides = [1, 1]} : vector<8x96xf32> to vector<8x32xf32>
    %249 = vector.extract_strided_slice %247 {offsets = [0, 0], sizes = [8, 32], strides = [1, 1]} : vector<8x96xf32> to vector<8x32xf32>
    %250 = arith.addf %248, %249 : vector<8x32xf32>
    %251 = arith.negf %250 : vector<8x32xf32>
    %252 = math.exp %251 : vector<8x32xf32>
    %cst_56 = arith.constant 1.000000e+00 : f32
    %253 = vector.broadcast %cst_56 : f32 to vector<8x32xf32>
    %254 = arith.addf %253, %252 : vector<8x32xf32>
    %255 = arith.divf %253, %254 : vector<8x32xf32>
    %256 = vector.extract_strided_slice %244 {offsets = [0, 32], sizes = [8, 32], strides = [1, 1]} : vector<8x96xf32> to vector<8x32xf32>
    %257 = vector.extract_strided_slice %247 {offsets = [0, 32], sizes = [8, 32], strides = [1, 1]} : vector<8x96xf32> to vector<8x32xf32>
    %258 = arith.addf %256, %257 : vector<8x32xf32>
    %259 = arith.negf %258 : vector<8x32xf32>
    %260 = math.exp %259 : vector<8x32xf32>
    %cst_57 = arith.constant 1.000000e+00 : f32
    %261 = vector.broadcast %cst_57 : f32 to vector<8x32xf32>
    %262 = arith.addf %261, %260 : vector<8x32xf32>
    %263 = arith.divf %261, %262 : vector<8x32xf32>
    %264 = vector.extract_strided_slice %244 {offsets = [0, 64], sizes = [8, 32], strides = [1, 1]} : vector<8x96xf32> to vector<8x32xf32>
    %265 = vector.extract_strided_slice %247 {offsets = [0, 64], sizes = [8, 32], strides = [1, 1]} : vector<8x96xf32> to vector<8x32xf32>
    %266 = arith.mulf %255, %265 : vector<8x32xf32>
    %267 = arith.addf %264, %266 : vector<8x32xf32>
    %268 = math.tanh %267 : vector<8x32xf32>
    %269 = arith.subf %238, %268 : vector<8x32xf32>
    %270 = arith.mulf %263, %269 : vector<8x32xf32>
    %271 = arith.addf %268, %270 : vector<8x32xf32>
    %272 = arith.index_cast %242 : i32 to index
    %c0_58 = arith.constant 0 : index
    %273 = vector.load %arg9[%272, %c0_58] : memref<64x32xf32, #tpu.memory_space<vmem>>, vector<8x32xf32>
    tpu.vector_store %arg9[%272, %c0_58], %271 {strides = array<i32>} : memref<64x32xf32, #tpu.memory_space<vmem>>, vector<8x32xf32>,
    %c8_i32_59 = arith.constant 8 : i32
    %c0_60 = arith.constant 0 : index
    %c0_61 = arith.constant 0 : index
    %274 = vector.load %arg9[%c0_60, %c0_61] : memref<64x32xf32, #tpu.memory_space<vmem>>, vector<64x32xf32>
    %c0_62 = arith.constant 0 : index
    %c0_63 = arith.constant 0 : index
    %275 = vector.load %arg6[%c0_62, %c0_63] : memref<32x8xf32, #tpu.memory_space<vmem>>, vector<32x8xf32>
    %cst_64 = arith.constant dense<0.000000e+00> : vector<64x8xf32>
    %276 = tpu.matmul %274, %275, %cst_64 {dimension_numbers = #tpu.dot_dimension_numbers<[1], [0], [0], [1], [0, 0, 1, 1], [], []>} : vector<64x32xf32>, vector<32x8xf32>, vector<64x8xf32> -> vector<64x8xf32>
    %c0_65 = arith.constant 0 : index
    %c0_66 = arith.constant 0 : index
    %277 = vector.load %arg7[%c0_65, %c0_66] : memref<1x8xf32, #tpu.memory_space<vmem>>, vector<1x8xf32>
    %278 = vector.broadcast %277 : vector<1x8xf32> to vector<64x8xf32>
    %279 = arith.addf %276, %278 : vector<64x8xf32>
    %c0_67 = arith.constant 0 : index
    %c0_68 = arith.constant 0 : index
    %280 = vector.load %arg8[%c0_67, %c0_68] : memref<64x8xf32, #tpu.memory_space<vmem>>, vector<64x8xf32>
    tpu.vector_store %arg8[%c0_67, %c0_68], %279 {strides = array<i32>} : memref<64x8xf32, #tpu.memory_space<vmem>>, vector<64x8xf32>,
    return
  }
  func.func @transform_0(%arg0: i32) -> (i32, i32) {
    %c0_i32 = arith.constant 0 : i32
    %c0_i32_0 = arith.constant 0 : i32
    %c0_i32_1 = arith.constant 0 : i32
    return %c0_i32, %c0_i32_0 : i32, i32
  }
  func.func @transform_1(%arg0: i32) -> (i32, i32) {
    %c0_i32 = arith.constant 0 : i32
    %c0_i32_0 = arith.constant 0 : i32
    %c0_i32_1 = arith.constant 0 : i32
    return %c0_i32, %c0_i32_0 : i32, i32
  }
  func.func @transform_2(%arg0: i32) -> (i32, i32) {
    %c0_i32 = arith.constant 0 : i32
    %c0_i32_0 = arith.constant 0 : i32
    %c0_i32_1 = arith.constant 0 : i32
    return %c0_i32, %c0_i32_0 : i32, i32
  }
  func.func @transform_3(%arg0: i32) -> (i32, i32) {
    %c0_i32 = arith.constant 0 : i32
    %c0_i32_0 = arith.constant 0 : i32
    %c0_i32_1 = arith.constant 0 : i32
    return %c0_i32, %c0_i32_0 : i32, i32
  }
  func.func @transform_4(%arg0: i32) -> (i32, i32) {
    %c0_i32 = arith.constant 0 : i32
    %c0_i32_0 = arith.constant 0 : i32
    %c0_i32_1 = arith.constant 0 : i32
    return %c0_i32, %c0_i32_0 : i32, i32
  }
  func.func @transform_5(%arg0: i32) -> (i32, i32) {
    %c0_i32 = arith.constant 0 : i32
    %c0_i32_0 = arith.constant 0 : i32
    %c0_i32_1 = arith.constant 0 : i32
    return %c0_i32, %c0_i32_0 : i32, i32
  }
  func.func @transform_6(%arg0: i32) -> (i32, i32) {
    %c0_i32 = arith.constant 0 : i32
    %c0_i32_0 = arith.constant 0 : i32
    %c0_i32_1 = arith.constant 0 : i32
    return %c0_i32, %c0_i32_0 : i32, i32
  }
  func.func @transform_7(%arg0: i32) -> (i32, i32) {
    %c0_i32 = arith.constant 0 : i32
    %c0_i32_0 = arith.constant 0 : i32
    %c0_i32_1 = arith.constant 0 : i32
    return %c0_i32, %c0_i32_0 : i32, i32
  }
  func.func @transform_8(%arg0: i32) -> (i32, i32) {
    %c0_i32 = arith.constant 0 : i32
    %c0_i32_0 = arith.constant 0 : i32
    %c0_i32_1 = arith.constant 0 : i32
    return %c0_i32, %c0_i32_0 : i32, i32
  }
}

</mosaic_0001>

<bundles_post_ra>
// kernel: tpu_custom_call.1
= control target key start
LH: loop header
LB: loop body
LE: loop exit
PB: predicated region body
PF: predicated region fallthrough
CT: control target
= control target key end

     0   :  { %vm45_vm0 = vcmask 130048   ;;  %v1575_v10 = vmov 0.0|0.0   ;;  %vm1576_vm1 = vmmov 0   ;;  %v1577_v16 = vmov 0.0   ;;  %s1578_s30 = smov 64   ;;  %s1580_s9 = smov 32   ;;  %s1935_s1 = inlined_call_operand.vmem [shape: f32[16,96], index: 1, kind: input, shape index: {}]   ;;  %s1936_s0 = inlined_call_operand.vmem [shape: f32[64,16], index: 0, kind: input, shape index: {}]   ;;  %s1937_s2 = inlined_call_operand.vmem [shape: f32[32,96], index: 2, kind: input, shape index: {}]   ;;  %s1938_s3 = inlined_call_operand.vmem [shape: f32[1,96], index: 3, kind: input, shape index: {}]   ;;  %s1939_s4 = inlined_call_operand.vmem [shape: f32[1,96], index: 4, kind: input, shape index: {}]   ;;  %s1940_s8 = inlined_call_operand.vmem [shape: f32[64,32], index: 8, kind: output, shape index: {1}]   ;;  %s1941_s5 = inlined_call_operand.vmem [shape: f32[32,8], index: 5, kind: input, shape index: {}]   ;;  %s1942_s6 = inlined_call_operand.vmem [shape: f32[1,8], index: 6, kind: input, shape index: {}]   ;;  %s1943_s7 = inlined_call_operand.vmem [shape: f32[64,8], index: 7, kind: output, shape index: {0}]  }
   0x1   :  { %v36_v0 = vld [vmem:[%s1935_s1] sm:$0xff]  ;;  %v37_v1 = vld [vmem:[%s1935_s1 + $0x8] sm:$0xff]  ;;  %v34_v11 = vld [vmem:[%s1936_s0 + $0x30] sm:$0xff]  ;;  %vm175_vm2 = vcmask 785408   ;;  %vm196_vm3 = vcmask 261120   ;;  %vm1215_vm4 = vcmask 64512  }
   0x2   :  { %v28_v2 = vld [vmem:[%s1936_s0] sm:$0xff]  ;;  %v1459_v3 = vpack.c.bf16 %v37_v1, %v36_v0  ;;  %v185_v6 = vld [vmem:[%s1937_s2 + $0x8] sm:$0xff]  ;;  %v186_v12 = vld [vmem:[%s1937_s2 + $0x10] sm:$0xff] }
   0x3   :  { %1339 = vmatprep.mubr.msk.f32.mxu0 %vm45_vm0, %v28_v2  ;;  %v32_v4 = vld [vmem:[%s1936_s0 + $0x20] sm:$0xff]  ;;  %v29_v7 = vld [vmem:[%s1936_s0 + $0x8] sm:$0xff]  ;;  %v187_v13 = vld [vmem:[%s1937_s2 + $0x18] sm:$0xff] }
   0x4   :  { %1345 = vmatprep.mubr.msk.f32.mxu1 %vm45_vm0, %v32_v4  ;;  %v184_v5 = vld [vmem:[%s1937_s2] sm:$0xff]  ;;  %1460 = vmatprep.subr.bf16.mxu0 %v1459_v3  ;;  %v33_v8 = vld [vmem:[%s1936_s0 + $0x28] sm:$0xff]  ;;  %v35_v14 = vld [vmem:[%s1936_s0 + $0x38] sm:$0xff]  ;;  %v1672_v15 = vpack.c.bf16 %v187_v13, %v186_v12 }
   0x5   :  { %1519 = vmatprep.subr.bf16.mxu1 %v1459_v3  ;;  %1462 = vmatpush3.bf16.msra.mxu0 %v1459_v3  ;;  %v1652_v9 = vpack.c.bf16 %v185_v6, %v184_v5  ;;  %v1694_v17 = vld [vmem:[%s1938_s3] ss:$0 sm:$0xff]  ;;  %v30_v2 = vld [vmem:[%s1936_s0 + $0x10] sm:$0xff] }
   0x6   :  { %1520 = vmatpush3.bf16.msra.mxu1 %v1459_v3  ;;  %1475 = vmatprep.subr.bf16.mxu0 %v1575_v10  ;;  %v1709_v30 = vld [vmem:[%s1939_s4] ss:$0 sm:$0xff]  ;;  %s1579_s4 = smov 96   ;;  %v31_v3 = vld [vmem:[%s1936_s0 + $0x18] sm:$0xff] }
   0x7   :  { %1463 = vmatprep.subr.bf16.mxu1 %v1575_v10 }
   0x8   :  { %1340 = vmatmul.mubr.msk.f32.vlgmr.msra.gmra.mrb[0].mxu0 %vm45_vm0, %v29_v7 }
   0x9   :  { %1346 = vmatmul.mubr.msk.f32.vlgmr.msra.gmra.mrb[0].mxu1 %vm45_vm0, %v33_v8  ;;  %1477 = vmatpush3.bf16.msra.mxu0 %v1652_v9 }
   0xa   :  { %1465 = vmatpush3.bf16.msra.mxu1 %v1652_v9  ;;  %1348 = vmatprep.mubr.msk.f32.mxu1 %vm45_vm0, %v34_v11 }
   0xb   :  { %1466 = vmatprep.subr.bf16.mxu1 %v1575_v10  ;;  %1478 = vmatprep.subr.bf16.mxu0 %v1575_v10 }
   0xc   :  { %1342 = vmatprep.mubr.msk.f32.mxu0 %vm45_vm0, %v30_v2 }
   0xd   :  { %1349 = vmatmul.mubr.msk.f32.gmra.mrb[2].mxu1 %vm45_vm0, %v35_v14  ;;  %1480 = vmatpush3.bf16.msra.mxu0 %v1672_v15 }
   0xe   :  { %1468 = vmatpush3.bf16.msra.mxu1 %v1672_v15  ;;  %1359 = vmatprep.mubr.msk.f32.mxu1 %vm1576_vm1, %v1577_v16 }
   0xf   :  { %1469 = vmatprep.subr.bf16.mxu1 %v1575_v10  ;;  %1487 = vmatprep.subr.bf16.mxu0 %v1575_v10 }
  0x10   :  { %1343 = vmatmul.mubr.msk.f32.gmra.mrb[2].mxu0 %vm45_vm0, %v31_v3 }
  0x11   :  { %1360 = vmatmul.mubr.f32.vlgmr.msra.gmra.mrb[4].mxu1 %v1577_v16  ;;  %1381 = vmatprep.mubr.msk.f32.mxu0 %vm1576_vm1, %v1577_v16 }
  0x12   :  { %1471 = vmatpush3.bf16.msra.mxu1 %v1652_v9  ;;  %1370 = vmatprep.mubr.msk.f32.mxu1 %vm1576_vm1, %v1577_v16 }
  0x13   :  { %1472 = vmatprep.subr.bf16.mxu1 %v1575_v10 }
  0x16   :  { %1474 = vmatpush3.bf16.msra.mxu1 %v1672_v15 }
  0x17   :  { %1481 = vmatprep.subr.bf16.mxu1 %v1575_v10 }
  0xdb   :  { %v1341_v18 = vpop.f32.mrb[0].mxu0 }
  0xdc   :  { %v1347_v19 = vpop.f32.mrb[0].mxu1  ;;  %v142_v20 = vadd.f32 %v1341_v18, %v1694_v17  ;;  %v136_v22 = vpop.f32.mrb[1].mxu0 }
  0xdd   :  { %v162_v21 = vadd.f32 %v1347_v19, %v1694_v17  ;;  %v156_v23 = vpop.f32.mrb[1].mxu1  ;;  %v137_v24 = vadd.f32 %v1694_v17, %v136_v22 }
  0xde   :  { %v157_v25 = vadd.f32 %v1694_v17, %v156_v23  ;;  %177 = vst.msk [vmem:[#allocation2 + $0x8] sm:$0xff] %vm175_vm2, %v142_v20 }
  0xdf   :  { %181 = vst.msk [vmem:[#allocation2 + $0x28] sm:$0xff] %vm175_vm2, %v162_v21  ;;  %176 = vst.msk [vmem:[#allocation2] sm:$0xff] %vm175_vm2, %v137_v24 }
  0xe0   :  { %180 = vst.msk [vmem:[#allocation2 + $0x20] sm:$0xff] %vm175_vm2, %v157_v25  ;;  %v1350_v26 = vpop.f32.mrb[2].mxu1 }
  0xe1   :  { %v172_v27 = vadd.f32 %v1350_v26, %v1694_v17  ;;  %v166_v28 = vpop.f32.mrb[3].mxu1 }
  0xe2   :  { %v167_v29 = vadd.f32 %v1694_v17, %v166_v28 }
  0xe3   :  { %183 = vst.msk [vmem:[#allocation2 + $0x38] sm:$0xff] %vm175_vm2, %v172_v27  ;;  %v1344_v8 = vpop.f32.mrb[2].mxu0 }
  0xe4   :  { %182 = vst.msk [vmem:[#allocation2 + $0x30] sm:$0xff] %vm175_vm2, %v167_v29  ;;  %v266_v31 = vpop.f32.mrb[4].mxu1  ;;  %v152_v11 = vadd.f32 %v1344_v8, %v1694_v17  ;;  %v146_v12 = vpop.f32.mrb[3].mxu0 }
  0xe5   :  { %v267_v32 = vadd.f32 %v1709_v30, %v266_v31  ;;  %v1361_v33 = vpop.f32.mrb[5].mxu1  ;;  %v305_v54 = vld [vmem:[#allocation2 + $0x8] sm:$0xff]  ;;  %v147_v13 = vadd.f32 %v1694_v17, %v146_v12 }
  0xe6   :  { %v189_v34 = vld [vmem:[#allocation2] sm:$0xff]  ;;  %179 = vst.msk [vmem:[#allocation2 + $0x18] sm:$0xff] %vm175_vm2, %v152_v11 }
  0xe7   :  { %278 = vrot.lane.b32.xlu0 %v267_v32, %s1578_s30  ;;  %v270_v35 = vadd.f32 %v267_v32, %v189_v34  ;;  %178 = vst.msk [vmem:[#allocation2 + $0x10] sm:$0xff] %vm175_vm2, %v147_v13 }
  0xe9   :  { %v1242_v36 = vmul.f32 -1.442695, %v270_v35 }
  0xeb   :  { %1527 = vpow2.f32 %v1242_v36 }
  0xee   :  { %v414_v20 = vld [vmem:[#allocation2 + $0x10] sm:$0xff] }
  0xf5   :  { %v1528_v37 = vpop.eup %1527 }
  0xf6   :  { %v274_v38 = vadd.f32 1.0, %v1528_v37 }
  0xf8   :  { %1529 = vrcp.f32 %v274_v38 }
 0x102   :  { %v1530_v39 = vpop.eup %1529 }
 0x159   :  { %v279_v40 = vpop.permute.xlu0 %278 }
 0x15a   :  { %v281_v41 = vmul.f32 %v1530_v39, %v279_v40 }
 0x15c   :  { %283 = vrot.lane.b32.xlu0 %v281_v41, %s1578_s30  ;;  %v523_v41 = vld [vmem:[#allocation2 + $0x18] sm:$0xff] }
 0x1ce   :  { %v284_v42 = vpop.permute.xlu0 %283 }
 0x1cf   :  { %v286_v43 = vadd.f32 %v284_v42, %v189_v34 }
 0x1d1   :  { %1531 = vtanh.f32 %v286_v43 }
 0x1db   :  { %v1532_v44 = vpop.eup %1531 }
 0x1dc   :  { %v288_v45 = vsub.f32 0.0, %v1532_v44 }
 0x1de   :  { %290 = vrot.lane.b32.xlu1 %v288_v45, %s1579_s4 }
 0x250   :  { %v291_v46 = vpop.permute.xlu1 %290 }
 0x251   :  { %v293_v47 = vmul.f32 %v1530_v39, %v291_v46 }
 0x253   :  { %295 = vrot.lane.b32.xlu1 %v293_v47, %s1580_s9 }
 0x2c5   :  { %v296_v48 = vpop.permute.xlu1 %295 }
 0x2c6   :  { %v298_v49 = vadd.f32 %v1532_v44, %v296_v48 }
 0x2c8   :  { %300 = vrot.lane.b32.xlu0 %v298_v49, %s1578_s30 }
 0x33a   :  { %v301_v50 = vpop.permute.xlu0 %300 }
 0x33b   :  { %303 = vst.msk [vmem:[%s1940_s8] sm:$0xff] %vm196_vm3, %v301_v50  ;;  %1371 = vmatmul.mubr.msk.f32.vlgmr.msra.gmra.mrb[6].mxu1 %vm196_vm3, %v301_v50 }
 0x33c   :  { %1483 = vmatpush3.bf16.msra.mxu1 %v1652_v9  ;;  %1392 = vmatprep.mubr.msk.f32.mxu1 %vm1576_vm1, %v1577_v16 }
 0x33d   :  { %1484 = vmatprep.subr.bf16.mxu1 %v1575_v10 }
 0x340   :  { %1486 = vmatpush3.bf16.msra.mxu1 %v1672_v15 }
 0x341   :  { %1493 = vmatprep.subr.bf16.mxu1 %v1575_v10 }
 0x40e   :  { %v374_v51 = vpop.f32.mrb[6].mxu1 }
 0x40f   :  { %v375_v52 = vadd.f32 %v1709_v30, %v374_v51  ;;  %v1372_v53 = vpop.f32.mrb[7].mxu1 }
 0x411   :  { %386 = vrot.lane.b32.xlu1 %v375_v52, %s1578_s30  ;;  %v378_v55 = vadd.f32 %v375_v52, %v305_v54 }
 0x413   :  { %v1244_v56 = vmul.f32 -1.442695, %v378_v55 }
 0x415   :  { %1533 = vpow2.f32 %v1244_v56 }
 0x41f   :  { %v1534_v57 = vpop.eup %1533 }
 0x420   :  { %v382_v58 = vadd.f32 1.0, %v1534_v57 }
 0x422   :  { %1535 = vrcp.f32 %v382_v58 }
 0x42c   :  { %v1536_v59 = vpop.eup %1535 }
 0x483   :  { %v387_v60 = vpop.permute.xlu1 %386 }
 0x484   :  { %v389_v61 = vmul.f32 %v1536_v59, %v387_v60 }
 0x486   :  { %391 = vrot.lane.b32.xlu0 %v389_v61, %s1578_s30  ;;  %v632_v61 = vld [vmem:[#allocation2 + $0x20] sm:$0xff] }
 0x4f8   :  { %v392_v62 = vpop.permute.xlu0 %391 }
 0x4f9   :  { %v394_v63 = vadd.f32 %v392_v62, %v305_v54 }
 0x4fb   :  { %1537 = vtanh.f32 %v394_v63 }
 0x505   :  { %v1538_v0 = vpop.eup %1537 }
 0x506   :  { %v396_v1 = vsub.f32 %v298_v49, %v1538_v0 }
 0x508   :  { %398 = vrot.lane.b32.xlu1 %v396_v1, %s1579_s4 }
 0x57a   :  { %v399_v4 = vpop.permute.xlu1 %398 }
 0x57b   :  { %v401_v5 = vmul.f32 %v1536_v59, %v399_v4 }
 0x57d   :  { %403 = vrot.lane.b32.xlu0 %v401_v5, %s1580_s9 }
 0x5ef   :  { %v404_v6 = vpop.permute.xlu0 %403 }
 0x5f0   :  { %v406_v7 = vadd.f32 %v1538_v0, %v404_v6 }
 0x5f2   :  { %408 = vrot.lane.b32.xlu1 %v406_v7, %s1578_s30 }
 0x664   :  { %v409_v14 = vpop.permute.xlu1 %408 }
 0x665   :  { %1245 = vst.msk [vmem:[%s1940_s8 + $0x8] sm:$0xff] %vm196_vm3, %v409_v14  ;;  %1382 = vmatmul.mubr.msk.f32.vlgmr.msra.gmra.mrb[4].mxu0 %vm196_vm3, %v409_v14 }
 0x666   :  { %1489 = vmatpush3.bf16.msra.mxu0 %v1652_v9  ;;  %1403 = vmatprep.mubr.msk.f32.mxu0 %vm1576_vm1, %v1577_v16 }
 0x667   :  { %1490 = vmatprep.subr.bf16.mxu0 %v1575_v10 }
 0x66a   :  { %1492 = vmatpush3.bf16.msra.mxu0 %v1672_v15 }
 0x66b   :  { %1499 = vmatprep.subr.bf16.mxu0 %v1575_v10 }
 0x738   :  { %v483_v17 = vpop.f32.mrb[4].mxu0 }
 0x739   :  { %v484_v18 = vadd.f32 %v1709_v30, %v483_v17  ;;  %v1383_v19 = vpop.f32.mrb[5].mxu0 }
 0x73b   :  { %495 = vrot.lane.b32.xlu0 %v484_v18, %s1578_s30  ;;  %v487_v21 = vadd.f32 %v484_v18, %v414_v20 }
 0x73d   :  { %v1247_v22 = vmul.f32 -1.442695, %v487_v21  ;;  %v741_v21 = vld [vmem:[#allocation2 + $0x28] sm:$0xff] }
 0x73f   :  { %1539 = vpow2.f32 %v1247_v22 }
 0x749   :  { %v1540_v23 = vpop.eup %1539 }
 0x74a   :  { %v491_v24 = vadd.f32 1.0, %v1540_v23 }
 0x74c   :  { %1541 = vrcp.f32 %v491_v24 }
 0x756   :  { %v1542_v25 = vpop.eup %1541 }
 0x7ad   :  { %v496_v26 = vpop.permute.xlu0 %495 }
 0x7ae   :  { %v498_v27 = vmul.f32 %v1542_v25, %v496_v26 }
 0x7b0   :  { %500 = vrot.lane.b32.xlu1 %v498_v27, %s1578_s30 }
 0x822   :  { %v501_v28 = vpop.permute.xlu1 %500 }
 0x823   :  { %v503_v29 = vadd.f32 %v501_v28, %v414_v20 }
 0x825   :  { %1543 = vtanh.f32 %v503_v29  ;;  %v1075_v29 = vld [vmem:[%s1941_s5] sm:$0xff] }
 0x82f   :  { %v1544_v31 = vpop.eup %1543 }
 0x830   :  { %v505_v32 = vsub.f32 %v406_v7, %v1544_v31 }
 0x832   :  { %507 = vrot.lane.b32.xlu0 %v505_v32, %s1579_s4 }
 0x8a4   :  { %v508_v33 = vpop.permute.xlu0 %507 }
 0x8a5   :  { %v510_v34 = vmul.f32 %v1542_v25, %v508_v33 }
 0x8a7   :  { %512 = vrot.lane.b32.xlu1 %v510_v34, %s1580_s9 }
 0x919   :  { %v513_v35 = vpop.permute.xlu1 %512 }
 0x91a   :  { %v515_v36 = vadd.f32 %v1544_v31, %v513_v35  ;;  %v1076_v31 = vld [vmem:[%s1941_s5 + $0x8] sm:$0xff] }
 0x91b   :  { %v1511_v32 = vpack.c.bf16 %v1076_v31, %v1075_v29 }
 0x91c   :  { %517 = vrot.lane.b32.xlu0 %v515_v36, %s1578_s30 }
 0x98e   :  { %v518_v37 = vpop.permute.xlu0 %517 }
 0x98f   :  { %1248 = vst.msk [vmem:[%s1940_s8 + $0x10] sm:$0xff] %vm196_vm3, %v518_v37  ;;  %1393 = vmatmul.mubr.msk.f32.vlgmr.msra.gmra.mrb[8].mxu1 %vm196_vm3, %v518_v37  ;;  %v1077_v37 = vld [vmem:[%s1941_s5 + $0x10] sm:$0xff] }
 0x990   :  { %1495 = vmatpush3.bf16.msra.mxu1 %v1652_v9  ;;  %1414 = vmatprep.mubr.msk.f32.mxu1 %vm1576_vm1, %v1577_v16 }
 0x991   :  { %1496 = vmatprep.subr.bf16.mxu1 %v1575_v10 }
 0x994   :  { %1498 = vmatpush3.bf16.msra.mxu1 %v1672_v15 }
 0x995   :  { %1505 = vmatprep.subr.bf16.mxu1 %v1575_v10 }
 0xa62   :  { %v592_v38 = vpop.f32.mrb[8].mxu1 }
 0xa63   :  { %v593_v39 = vadd.f32 %v1709_v30, %v592_v38  ;;  %v1394_v40 = vpop.f32.mrb[9].mxu1  ;;  %v1078_v38 = vld [vmem:[%s1941_s5 + $0x18] sm:$0xff] }
 0xa65   :  { %604 = vrot.lane.b32.xlu1 %v593_v39, %s1578_s30  ;;  %v596_v42 = vadd.f32 %v593_v39, %v523_v41  ;;  %v1515_v39 = vpack.c.bf16 %v1078_v38, %v1077_v37 }
 0xa67   :  { %v1250_v43 = vmul.f32 -1.442695, %v596_v42  ;;  %v1068_v42 = vld [vmem:[%s1940_s8 + $0x8] sm:$0xff] }
 0xa69   :  { %1545 = vpow2.f32 %v1250_v43  ;;  %v1069_v43 = vld [vmem:[%s1940_s8 + $0x10] sm:$0xff] }
 0xa73   :  { %v1546_v44 = vpop.eup %1545 }
 0xa74   :  { %v600_v45 = vadd.f32 1.0, %v1546_v44 }
 0xa76   :  { %1547 = vrcp.f32 %v600_v45 }
 0xa80   :  { %v1548_v46 = vpop.eup %1547 }
 0xad7   :  { %v605_v47 = vpop.permute.xlu1 %604 }
 0xad8   :  { %v607_v48 = vmul.f32 %v1548_v46, %v605_v47 }
 0xada   :  { %609 = vrot.lane.b32.xlu0 %v607_v48, %s1578_s30 }
 0xb4c   :  { %v610_v49 = vpop.permute.xlu0 %609 }
 0xb4d   :  { %v612_v50 = vadd.f32 %v610_v49, %v523_v41  ;;  %v1067_v41 = vld [vmem:[%s1940_s8] sm:$0xff] }
 0xb4f   :  { %1549 = vtanh.f32 %v612_v50  ;;  %v1865_v50 = vld [vmem:[%s1942_s6] ss:$0 sm:$0xff] }
 0xb59   :  { %v1550_v51 = vpop.eup %1549 }
 0xb5a   :  { %v614_v52 = vsub.f32 %v515_v36, %v1550_v51 }
 0xb5c   :  { %616 = vrot.lane.b32.xlu1 %v614_v52, %s1579_s4 }
 0xbce   :  { %v617_v53 = vpop.permute.xlu1 %616 }
 0xbcf   :  { %v619_v54 = vmul.f32 %v1548_v46, %v617_v53 }
 0xbd1   :  { %621 = vrot.lane.b32.xlu0 %v619_v54, %s1580_s9 }
 0xc43   :  { %v622_v55 = vpop.permute.xlu0 %621 }
 0xc44   :  { %v624_v56 = vadd.f32 %v1550_v51, %v622_v55 }
 0xc46   :  { %626 = vrot.lane.b32.xlu1 %v624_v56, %s1578_s30 }
 0xcb8   :  { %v627_v57 = vpop.permute.xlu1 %626 }
 0xcb9   :  { %1251 = vst.msk [vmem:[%s1940_s8 + $0x18] sm:$0xff] %vm196_vm3, %v627_v57  ;;  %1404 = vmatmul.mubr.msk.f32.vlgmr.msra.gmra.mrb[6].mxu0 %vm196_vm3, %v627_v57 }
 0xcba   :  { %1501 = vmatpush3.bf16.msra.mxu0 %v1652_v9  ;;  %1425 = vmatprep.mubr.msk.f32.mxu0 %vm1576_vm1, %v1577_v16 }
 0xcbb   :  { %1502 = vmatprep.subr.bf16.mxu0 %v1575_v10 }
 0xcbe   :  { %1504 = vmatpush3.bf16.msra.mxu0 %v1672_v15 }
 0xcbf   :  { %1512 = vmatprep.subr.bf16.mxu0 %v1511_v32 }
 0xcc0   :  { %v1070_v44 = vld [vmem:[%s1940_s8 + $0x18] sm:$0xff] }
 0xd8c   :  { %v701_v58 = vpop.f32.mrb[6].mxu0 }
 0xd8d   :  { %v702_v59 = vadd.f32 %v1709_v30, %v701_v58  ;;  %v1405_v60 = vpop.f32.mrb[7].mxu0 }
 0xd8f   :  { %713 = vrot.lane.b32.xlu0 %v702_v59, %s1578_s30  ;;  %v705_v62 = vadd.f32 %v702_v59, %v632_v61 }
 0xd91   :  { %v1253_v63 = vmul.f32 -1.442695, %v705_v62 }
 0xd93   :  { %1551 = vpow2.f32 %v1253_v63  ;;  %v850_v63 = vld [vmem:[#allocation2 + $0x30] sm:$0xff] }
 0xd9d   :  { %v1552_v0 = vpop.eup %1551 }
 0xd9e   :  { %v709_v1 = vadd.f32 1.0, %v1552_v0 }
 0xda0   :  { %1553 = vrcp.f32 %v709_v1 }
 0xdaa   :  { %v1554_v2 = vpop.eup %1553 }
 0xe01   :  { %v714_v3 = vpop.permute.xlu0 %713 }
 0xe02   :  { %v716_v4 = vmul.f32 %v1554_v2, %v714_v3 }
 0xe04   :  { %718 = vrot.lane.b32.xlu1 %v716_v4, %s1578_s30 }
 0xe76   :  { %v719_v5 = vpop.permute.xlu1 %718 }
 0xe77   :  { %v721_v6 = vadd.f32 %v719_v5, %v632_v61 }
 0xe79   :  { %1555 = vtanh.f32 %v721_v6 }
 0xe83   :  { %v1556_v7 = vpop.eup %1555 }
 0xe84   :  { %v723_v8 = vsub.f32 %v624_v56, %v1556_v7 }
 0xe86   :  { %725 = vrot.lane.b32.xlu0 %v723_v8, %s1579_s4 }
 0xef8   :  { %v726_v11 = vpop.permute.xlu0 %725 }
 0xef9   :  { %v728_v12 = vmul.f32 %v1554_v2, %v726_v11 }
 0xefb   :  { %730 = vrot.lane.b32.xlu1 %v728_v12, %s1580_s9 }
 0xf6d   :  { %v731_v13 = vpop.permute.xlu1 %730 }
 0xf6e   :  { %v733_v14 = vadd.f32 %v1556_v7, %v731_v13 }
 0xf70   :  { %735 = vrot.lane.b32.xlu0 %v733_v14, %s1578_s30 }
 0xfe2   :  { %v736_v17 = vpop.permute.xlu0 %735 }
 0xfe3   :  { %1254 = vst.msk [vmem:[%s1940_s8 + $0x20] sm:$0xff] %vm196_vm3, %v736_v17  ;;  %1415 = vmatmul.mubr.msk.f32.vlgmr.msra.gmra.mrb[10].mxu1 %vm196_vm3, %v736_v17 }
 0xfe4   :  { %1507 = vmatpush3.bf16.msra.mxu1 %v1652_v9  ;;  %1436 = vmatprep.mubr.msk.f32.mxu1 %vm1576_vm1, %v1577_v16 }
 0xfe5   :  { %1508 = vmatprep.subr.bf16.mxu1 %v1575_v10 }
 0xfe8   :  { %1510 = vmatpush3.bf16.msra.mxu1 %v1672_v15 }
 0xfea   :  { %v1071_v45 = vld [vmem:[%s1940_s8 + $0x20] sm:$0xff] }
0x10b6   :  { %v810_v18 = vpop.f32.mrb[10].mxu1 }
0x10b7   :  { %v811_v19 = vadd.f32 %v1709_v30, %v810_v18  ;;  %v1416_v20 = vpop.f32.mrb[11].mxu1 }
0x10b9   :  { %822 = vrot.lane.b32.xlu1 %v811_v19, %s1578_s30  ;;  %v814_v22 = vadd.f32 %v811_v19, %v741_v21 }
0x10bb   :  { %v1256_v23 = vmul.f32 -1.442695, %v814_v22 }
0x10bd   :  { %1557 = vpow2.f32 %v1256_v23 }
0x10c7   :  { %v1558_v24 = vpop.eup %1557 }
0x10c8   :  { %v818_v25 = vadd.f32 1.0, %v1558_v24  ;;  %v959_v24 = vld [vmem:[#allocation2 + $0x38] sm:$0xff] }
0x10ca   :  { %1559 = vrcp.f32 %v818_v25 }
0x10d4   :  { %v1560_v9 = vpop.eup %1559 }
0x112b   :  { %v823_v26 = vpop.permute.xlu1 %822 }
0x112c   :  { %v825_v16 = vmul.f32 %v1560_v9, %v823_v26 }
0x112e   :  { %827 = vrot.lane.b32.xlu0 %v825_v16, %s1578_s30 }
0x11a0   :  { %v828_v10 = vpop.permute.xlu0 %827 }
0x11a1   :  { %v830_v15 = vadd.f32 %v828_v10, %v741_v21 }
0x11a3   :  { %1561 = vtanh.f32 %v830_v15 }
0x11ad   :  { %v1562_v27 = vpop.eup %1561 }
0x11ae   :  { %v832_v28 = vsub.f32 %v733_v14, %v1562_v27 }
0x11b0   :  { %834 = vrot.lane.b32.xlu1 %v832_v28, %s1579_s4 }
0x1222   :  { %v835_v33 = vpop.permute.xlu1 %834 }
0x1223   :  { %v837_v34 = vmul.f32 %v1560_v9, %v835_v33 }
0x1225   :  { %839 = vrot.lane.b32.xlu0 %v837_v34, %s1580_s9 }
0x1297   :  { %v840_v35 = vpop.permute.xlu0 %839 }
0x1298   :  { %v1821_v36 = vadd.f32 %v1562_v27, %v840_v35 }
0x129a   :  { %844 = vrot.lane.b32.xlu1 %v1821_v36, %s1578_s30 }
0x130c   :  { %v845_v40 = vpop.permute.xlu1 %844 }
0x130d   :  { %1257 = vst.msk [vmem:[%s1940_s8 + $0x28] sm:$0xff] %vm196_vm3, %v845_v40  ;;  %1426 = vmatmul.mubr.msk.f32.vlgmr.msra.gmra.mrb[8].mxu0 %vm196_vm3, %v845_v40 }
0x130e   :  { %1514 = vmatpush3.bf16.msra.mxu0 %v1511_v32  ;;  %1447 = vmatprep.mubr.msk.f32.mxu0 %vm196_vm3, %v1067_v41 }
0x130f   :  { %1516 = vmatprep.subr.bf16.mxu0 %v1515_v39 }
0x1312   :  { %1518 = vmatpush3.bf16.msra.mxu0 %v1515_v39 }
0x1314   :  { %v1072_v46 = vld [vmem:[%s1940_s8 + $0x28] sm:$0xff] }
0x1315   :  { %1448 = vmatmul.mubr.msk.f32.vlgmr.msra.gmra.mrb[10].mxu0 %vm196_vm3, %v1068_v42 }
0x1316   :  { %1450 = vmatprep.mubr.msk.f32.mxu0 %vm196_vm3, %v1069_v43 }
0x1319   :  { %1451 = vmatmul.mubr.msk.f32.gmra.mrb[12].mxu0 %vm196_vm3, %v1070_v44 }
0x131a   :  { %1453 = vmatprep.mubr.msk.f32.mxu0 %vm196_vm3, %v1071_v45 }
0x131d   :  { %1454 = vmatmul.mubr.msk.f32.gmra.mrb[14].mxu0 %vm196_vm3, %v1072_v46 }
0x13e0   :  { %v919_v47 = vpop.f32.mrb[8].mxu0 }
0x13e1   :  { %v920_v48 = vadd.f32 %v1709_v30, %v919_v47  ;;  %v1427_v49 = vpop.f32.mrb[9].mxu0 }
0x13e3   :  { %931 = vrot.lane.b32.xlu0 %v920_v48, %s1578_s30  ;;  %v923_v0 = vadd.f32 %v920_v48, %v850_v63 }
0x13e5   :  { %v1259_v1 = vmul.f32 -1.442695, %v923_v0 }
0x13e7   :  { %1563 = vpow2.f32 %v1259_v1 }
0x13e8   :  { %v1449_v51 = vpop.f32.mrb[10].mxu0 }
0x13e9   :  { %v1182_v52 = vadd.f32 %v1449_v51, %v1865_v50  ;;  %v1176_v53 = vpop.f32.mrb[11].mxu0 }
0x13ea   :  { %v1177_v54 = vadd.f32 %v1865_v50, %v1176_v53 }
0x13eb   :  { %1217 = vst.msk [vmem:[%s1943_s7 + $0x8] sm:$0xff] %vm1215_vm4, %v1182_v52 }
0x13ec   :  { %1216 = vst.msk [vmem:[%s1943_s7] sm:$0xff] %vm1215_vm4, %v1177_v54  ;;  %v1452_v55 = vpop.f32.mrb[12].mxu0 }
0x13ed   :  { %v1192_v56 = vadd.f32 %v1452_v55, %v1865_v50  ;;  %v1186_v57 = vpop.f32.mrb[13].mxu0 }
0x13ee   :  { %v1187_v58 = vadd.f32 %v1865_v50, %v1186_v57 }
0x13ef   :  { %1219 = vst.msk [vmem:[%s1943_s7 + $0x18] sm:$0xff] %vm1215_vm4, %v1192_v56 }
0x13f0   :  { %1218 = vst.msk [vmem:[%s1943_s7 + $0x10] sm:$0xff] %vm1215_vm4, %v1187_v58  ;;  %v1455_v59 = vpop.f32.mrb[14].mxu0 }
0x13f1   :  { %v1202_v60 = vadd.f32 %v1455_v59, %v1865_v50  ;;  %v1196_v61 = vpop.f32.mrb[15].mxu0  ;;  %v1564_v2 = vpop.eup %1563 }
0x13f2   :  { %v1197_v62 = vadd.f32 %v1865_v50, %v1196_v61  ;;  %v927_v3 = vadd.f32 1.0, %v1564_v2 }
0x13f3   :  { %1221 = vst.msk [vmem:[%s1943_s7 + $0x28] sm:$0xff] %vm1215_vm4, %v1202_v60 }
0x13f4   :  { %1220 = vst.msk [vmem:[%s1943_s7 + $0x20] sm:$0xff] %vm1215_vm4, %v1197_v62  ;;  %1565 = vrcp.f32 %v927_v3 }
0x13fe   :  { %v1566_v4 = vpop.eup %1565 }
0x1455   :  { %v932_v5 = vpop.permute.xlu0 %931 }
0x1456   :  { %v934_v6 = vmul.f32 %v1566_v4, %v932_v5 }
0x1458   :  { %936 = vrot.lane.b32.xlu1 %v934_v6, %s1578_s30 }
0x14ca   :  { %v937_v7 = vpop.permute.xlu1 %936 }
0x14cb   :  { %v939_v8 = vadd.f32 %v937_v7, %v850_v63 }
0x14cd   :  { %1567 = vtanh.f32 %v939_v8 }
0x14d7   :  { %v1568_v11 = vpop.eup %1567 }
0x14d8   :  { %v941_v12 = vsub.f32 %v1821_v36, %v1568_v11 }
0x14da   :  { %943 = vrot.lane.b32.xlu0 %v941_v12, %s1579_s4 }
0x154c   :  { %v944_v13 = vpop.permute.xlu0 %943 }
0x154d   :  { %v946_v14 = vmul.f32 %v1566_v4, %v944_v13 }
0x154f   :  { %948 = vrot.lane.b32.xlu1 %v946_v14, %s1580_s9 }
0x15c1   :  { %v949_v17 = vpop.permute.xlu1 %948 }
0x15c2   :  { %v951_v18 = vadd.f32 %v1568_v11, %v949_v17 }
0x15c4   :  { %953 = vrot.lane.b32.xlu0 %v951_v18, %s1578_s30 }
0x1636   :  { %v954_v19 = vpop.permute.xlu0 %953 }
0x1637   :  { %1260 = vst.msk [vmem:[%s1940_s8 + $0x30] sm:$0xff] %vm196_vm3, %v954_v19  ;;  %1437 = vmatmul.mubr.msk.f32.vlgmr.msra.gmra.mrb[12].mxu1 %vm196_vm3, %v954_v19 }
0x163e   :  { %v1073_v20 = vld [vmem:[%s1940_s8 + $0x30] sm:$0xff] }
0x163f   :  { %1456 = vmatprep.mubr.msk.f32.mxu0 %vm196_vm3, %v1073_v20 }
0x170a   :  { %v1028_v21 = vpop.f32.mrb[12].mxu1 }
0x170b   :  { %v1029_v22 = vadd.f32 %v1709_v30, %v1028_v21  ;;  %v1438_v23 = vpop.f32.mrb[13].mxu1 }
0x170d   :  { %1040 = vrot.lane.b32.xlu1 %v1029_v22, %s1578_s30  ;;  %v1032_v25 = vadd.f32 %v1029_v22, %v959_v24 }
0x170f   :  { %v1262_v9 = vmul.f32 -1.442695, %v1032_v25 }
0x1711   :  { %1569 = vpow2.f32 %v1262_v9 }
0x171b   :  { %v1570_v26 = vpop.eup %1569 }
0x171c   :  { %v1036_v16 = vadd.f32 1.0, %v1570_v26 }
0x171e   :  { %1571 = vrcp.f32 %v1036_v16 }
0x1728   :  { %v1572_v10 = vpop.eup %1571 }
0x177f   :  { %v1041_v15 = vpop.permute.xlu1 %1040 }
0x1780   :  { %v1043_v27 = vmul.f32 %v1572_v10, %v1041_v15 }
0x1782   :  { %1045 = vrot.lane.b32.xlu0 %v1043_v27, %s1578_s30 }
0x17f4   :  { %v1046_v28 = vpop.permute.xlu0 %1045 }
0x17f5   :  { %v1048_v29 = vadd.f32 %v1046_v28, %v959_v24 }
0x17f7   :  { %1573 = vtanh.f32 %v1048_v29 }
0x1801   :  { %v1574_v31 = vpop.eup %1573 }
0x1802   :  { %v1050_v30 = vsub.f32 %v951_v18, %v1574_v31 }
0x1804   :  { %1052 = vrot.lane.b32.xlu1 %v1050_v30, %s1579_s4 }
0x1876   :  { %v1053_v32 = vpop.permute.xlu1 %1052 }
0x1877   :  { %v1055_v33 = vmul.f32 %v1572_v10, %v1053_v32 }
0x1879   :  { %1057 = vrot.lane.b32.xlu0 %v1055_v33, %s1580_s9 }
0x18eb   :  { %v1058_v34 = vpop.permute.xlu0 %1057 }
0x18ec   :  { %v1060_v35 = vadd.f32 %v1574_v31, %v1058_v34 }
0x18ee   :  { %1062 = vrot.lane.b32.xlu1 %v1060_v35, %s1578_s30 }
0x1960   :  { %v1063_v36 = vpop.permute.xlu1 %1062 }
0x1961   :  { %1263 = vst.msk [vmem:[%s1940_s8 + $0x38] sm:$0xff] %vm196_vm3, %v1063_v36 }
0x1968   :  { %v1074_v37 = vld [vmem:[%s1940_s8 + $0x38] sm:$0xff] }
0x1969   :  { %1457 = vmatmul.mubr.msk.f32.gmra.mrb[16].mxu0 %vm196_vm3, %v1074_v37 }
0x1a3c   :  { %v1458_v38 = vpop.f32.mrb[16].mxu0 }
0x1a3d   :  { %v1212_v39 = vadd.f32 %v1458_v38, %v1865_v50  ;;  %v1206_v40 = vpop.f32.mrb[17].mxu0 }
0x1a3e   :  { %v1207_v41 = vadd.f32 %v1865_v50, %v1206_v40 }
0x1a3f   :  { %1223 = vst.msk [vmem:[%s1943_s7 + $0x38] sm:$0xff] %vm1215_vm4, %v1212_v39 }
0x1a40   :  { %1222 = vst.msk [vmem:[%s1943_s7 + $0x30] sm:$0xff] %vm1215_vm4, %v1207_v41 }

</bundles_post_ra>
